<compile_context>
chip_gen: v7x
topology: tpu7x:2x2x1
jax: 0.10.0
libtpu: 0.0.40
codegen_flags: <defaults>
</compile_context>

<pallas_src>
import functools

import jax
import jax.numpy as jnp
from jax.experimental import pallas as pl
from jax.experimental.pallas import tpu as pltpu

BN_EPS = 1e-5
LEAKY_SLOPE = 0.01  # nn.LeakyReLU default negative_slope


def _sigmoid(x):
    # Numerically stable, EUP-friendly (tanh), avoids the f32 divide/exp-inf.
    return 0.5 * jnp.tanh(0.5 * x) + 0.5


def _tensorcores_per_chip():
    """2 on v7x / megacore chips, else 1 (v5e / v6e)."""
    try:
        kind = jax.devices()[0].device_kind.lower()
    except Exception:  # pragma: no cover
        return 1
    if 'v7' in kind or 'v5p' in kind or 'v4' in kind:
        return 2
    return 1


def _fused_kernel(x_ref, wv_ref, bv_ref, wg_ref, bg_ref, w2_ref, b2_ref,
                  w3_ref, w1bd_ref, b1f_ref, w2bd_ref, b2f_ref, o_ref,
                  *, bpg, kt, d, n, t2n):
    # x_ref  : (bpg, C, T*N)   NCHW flattened over (T, N) -> lane-dense rows
    # wv/wg  : (C, kt*C)       stacked-tap GLU value / gate weights
    #                          (residual identity already folded into wv)
    # bv/bg  : (C, 1)          GLU value / gate biases
    # w2/b2  : (C, C)/(C, 1)   sigmoid 1x1 conv with BatchNorm folded in
    # w3     : (C, 1)          Conv2d(C,1,1) weight (bias folded into b1f)
    # w1bd   : (T2*12, T2*12)  block-diag fc1 weight (lane-flat layout)
    # b1f    : (1, T2*12)      tiled fc1 bias (+ folded conv bias)
    # w2bd   : (T2*12, T2*5)   block-diag fc2 weight
    # b2f    : (1, T2*5)       tiled fc2 bias
    # o_ref  : (bpg, 1, T2*5)
    for bi in range(bpg):                                   # static unroll
        x = x_ref[bi]                                       # (C, T*N)

        # Stack the kt dilated taps along the contraction dim -> (kt*C, T2*N),
        # then one MXU push each for the GLU value and gate halves.
        xs = jnp.concatenate(
            [x[:, j * d * n: j * d * n + t2n] for j in range(kt)], axis=0)
        val = jnp.dot(wv_ref[...], xs,
                      preferred_element_type=jnp.float32) + bv_ref[...]
        gate = jnp.dot(wg_ref[...], xs,
                       preferred_element_type=jnp.float32) + bg_ref[...]
        glu = val * _sigmoid(gate)                          # (C, T2*N)

        # sigmoid 1x1 conv with eval-mode BatchNorm folded into (w2, b2).
        y = _sigmoid(jnp.dot(w2_ref[...], glu,
                             preferred_element_type=jnp.float32) + b2_ref[...])

        # Conv2d(C,1,1) channel collapse on the VPU/XLU (no M=1 MXU push).
        z = jnp.sum(y * w3_ref[...], axis=0, keepdims=True)  # (1, T2*N)

        # fc head in the flat lane layout via block-diagonal weights.
        h = jnp.dot(z, w1bd_ref[...],
                    preferred_element_type=jnp.float32) + b1f_ref[...]
        h = jnp.where(h >= 0, h, LEAKY_SLOPE * h)            # LeakyReLU(0.01)
        out = jnp.dot(h, w2bd_ref[...],
                      preferred_element_type=jnp.float32) + b2f_ref[...]
        o_ref[bi] = out.astype(o_ref.dtype)                  # (1, T2*5)


def output_layer_forward(x, params, *, kt, dilation):
    """x: [B, C, T, N] -> [B, T - dilation*(kt-1), 5]  (eval-mode forward)."""
    B, C, T, N = x.shape
    assert N == 12, "OutputLayer fc head requires n_route == 12"
    d = dilation
    T2 = T - d * (kt - 1)
    TN, T2N = T * N, T2 * N
    n_hidden = params['fc1_w'].shape[0]     # 12
    n_out = params['fc2_w'].shape[0]        # 5

    # ---- constant folding in the wrapper (all hoisted out of the kernel) ---
    # GLU conv weights, value/gate split; residual identity folded into the
    # last tap of the value half.
    Wglu = params['glu_w'][:, :, :, 0]                       # (2C, C, kt)
    Wv = Wglu[:C].at[:, :, kt - 1].add(jnp.eye(C, dtype=Wglu.dtype))
    Wg = Wglu[C:]
    wv = jnp.concatenate([Wv[:, :, j] for j in range(kt)], axis=1)   # (C, kt*C)
    wg = jnp.concatenate([Wg[:, :, j] for j in range(kt)], axis=1)   # (C, kt*C)
    bv = params['glu_b'][:C].reshape(C, 1)
    bg = params['glu_b'][C:].reshape(C, 1)

    # Eval-mode BatchNorm folded into the sigmoid 1x1 conv.
    bn_scale = params['bn_gamma'] / jnp.sqrt(params['bn_var'] + BN_EPS)
    bn_shift = params['bn_beta'] - params['bn_mean'] * bn_scale
    sig_w = params['sig_w'][:, :, 0, 0]                      # (C, C)
    w2 = sig_w * bn_scale[None, :]
    b2 = (sig_w @ bn_shift + params['sig_b']).reshape(C, 1)

    # Conv2d(C,1,1): weight as a (C,1) column for broadcast+reduce; bias folded
    # into the fc1 bias below.
    w3 = params['out_w'][0, :, 0, 0].reshape(C, 1)
    b3 = params['out_b'][0]

    # fc head as block-diagonal matmuls over the flat (T2*N) lane row.
    w1t = params['fc1_w'].T                                  # (12, 12)
    w2t = params['fc2_w'].T                                  # (12, 5)
    w1bd = jnp.kron(jnp.eye(T2, dtype=w1t.dtype), w1t)       # (T2*12, T2*12)
    w2bd = jnp.kron(jnp.eye(T2, dtype=w2t.dtype), w2t)       # (T2*12, T2*5)
    b1f = jnp.tile(params['fc1_b'] + b3 * w1t.sum(axis=0),
                   T2).reshape(1, T2 * n_hidden)
    b2f = jnp.tile(params['fc2_b'], T2).reshape(1, T2 * n_out)

    x_flat = x.reshape(B, C, TN)            # NCHW kept; free row-major reshape

    # Generation-aware grid: one step per TensorCore (batch unrolled inside).
    num_tc = _tensorcores_per_chip()
    steps = num_tc if (num_tc > 1 and B % num_tc == 0) else 1
    bpg = B // steps

    kernel = functools.partial(_fused_kernel, bpg=bpg, kt=kt, d=d, n=N, t2n=T2N)
    wspec = lambda shape: pl.BlockSpec(shape, lambda b: (0, 0))
    out = pl.pallas_call(
        kernel,
        out_shape=jax.ShapeDtypeStruct((B, 1, T2 * n_out), x.dtype),
        grid=(steps,),
        in_specs=[
            pl.BlockSpec((bpg, C, TN), lambda b: (b, 0, 0)),
            wspec((C, kt * C)),                  # wv
            wspec((C, 1)),                       # bv
            wspec((C, kt * C)),                  # wg
            wspec((C, 1)),                       # bg
            wspec((C, C)),                       # w2 (BN folded)
            wspec((C, 1)),                       # b2 (BN folded)
            wspec((C, 1)),                       # w3
            wspec((T2 * n_hidden, T2 * n_hidden)),   # fc1 block-diag
            wspec((1, T2 * n_hidden)),               # fc1 bias (+ b3 fold)
            wspec((T2 * n_hidden, T2 * n_out)),      # fc2 block-diag
            wspec((1, T2 * n_out)),                  # fc2 bias
        ],
        out_specs=pl.BlockSpec((bpg, 1, T2 * n_out), lambda b: (b, 0, 0)),
        compiler_params=pltpu.CompilerParams(
            dimension_semantics=("parallel",)),
    )(x_flat, wv, bv, wg, bg, w2, b2, w3, w1bd, b1f, w2bd, b2f)

    # (B, 1, T2*5) -> (B, T2, 5): pure row-major regrouping, no transpose.
    return out.reshape(B, T2, n_out)


def output_layer_reference(x, params, *, kt, dilation):
    """Pure-JAX reference mirroring the PyTorch eval-mode forward exactly."""
    B, C, T, N = x.shape
    d = dilation
    T2 = T - d * (kt - 1)
    Wg = params['glu_w'][:, :, :, 0]                       # (2C, C, kt)
    conv = jnp.zeros((B, 2 * C, T2, N), dtype=jnp.float32)
    for j in range(kt):
        xj = x[:, :, d * j:d * j + T2, :]
        conv = conv + jnp.einsum('oc,bctn->botn', Wg[:, :, j], xj)
    conv = conv + params['glu_b'][None, :, None, None]
    x_in = x[:, :, d * (kt - 1):, :]
    glu = (conv[:, :C] + x_in) * jax.nn.sigmoid(conv[:, C:])
    bn = ((glu - params['bn_mean'][None, :, None, None])
          / jnp.sqrt(params['bn_var'] + BN_EPS)[None, :, None, None]
          * params['bn_gamma'][None, :, None, None]
          + params['bn_beta'][None, :, None, None])
    s = jax.nn.sigmoid(
        jnp.einsum('oc,bctn->botn', params['sig_w'][:, :, 0, 0], bn)
        + params['sig_b'][None, :, None, None])
    z = (jnp.einsum('oc,bctn->botn', params['out_w'][:, :, 0, 0], s)
         + params['out_b'][None, :, None, None])
    z = z[:, 0]                                            # squeeze -> (B,T2,N)
    h = z @ params['fc1_w'].T + params['fc1_b']
    h = jnp.where(h >= 0, h, LEAKY_SLOPE * h)
    return h @ params['fc2_w'].T + params['fc2_b']


if __name__ == "__main__":
    # Small shapes implied by the module: n_route N = 12 (fc head is 12->12->5).
    B, C, T, N = 2, 4, 16, 12
    kt, dilation = 3, 1
    T2 = T - dilation * (kt - 1)

    key = jax.random.PRNGKey(0)
    ks = jax.random.split(key, 15)
    params = {
        'glu_w': jax.random.normal(ks[0], (2 * C, C, kt, 1), jnp.float32) * 0.2,
        'glu_b': jax.random.normal(ks[1], (2 * C,), jnp.float32) * 0.1,
        'bn_gamma': 1.0 + 0.1 * jax.random.normal(ks[2], (C,), jnp.float32),
        'bn_beta': 0.1 * jax.random.normal(ks[3], (C,), jnp.float32),
        'bn_mean': 0.1 * jax.random.normal(ks[4], (C,), jnp.float32),
        'bn_var': 0.5 + jax.random.uniform(ks[5], (C,), jnp.float32),
        'sig_w': jax.random.normal(ks[6], (C, C, 1, 1), jnp.float32) * 0.2,
        'sig_b': jax.random.normal(ks[7], (C,), jnp.float32) * 0.1,
        'out_w': jax.random.normal(ks[8], (1, C, 1, 1), jnp.float32) * 0.2,
        'out_b': jax.random.normal(ks[9], (1,), jnp.float32) * 0.1,
        'fc1_w': jax.random.normal(ks[10], (12, 12), jnp.float32) * 0.2,
        'fc1_b': jax.random.normal(ks[11], (12,), jnp.float32) * 0.1,
        'fc2_w': jax.random.normal(ks[12], (5, 12), jnp.float32) * 0.2,
        'fc2_b': jax.random.normal(ks[13], (5,), jnp.float32) * 0.1,
    }
    x = jax.random.normal(ks[14], (B, C, T, N), jnp.float32)

    out = jax.block_until_ready(
        output_layer_forward(x, params, kt=kt, dilation=dilation))
    ref = jax.block_until_ready(
        output_layer_reference(x, params, kt=kt, dilation=dilation))

    assert out.shape == (B, T2, 5), out.shape
    assert jnp.allclose(out, ref, atol=1e-4, rtol=1e-4), (
        float(jnp.max(jnp.abs(out - ref))))
    print("KERNEL_OK")
</pallas_src>

<mosaic_0001>
module attributes {stable_mosaic.version = 11 : i64} {
  func.func @_fused_kernel(%arg0: i32, %arg1: memref<2x4x192xf32, #tpu.memory_space<vmem>>, %arg2: memref<4x12xf32, #tpu.memory_space<vmem>>, %arg3: memref<4x1xf32, #tpu.memory_space<vmem>>, %arg4: memref<4x12xf32, #tpu.memory_space<vmem>>, %arg5: memref<4x1xf32, #tpu.memory_space<vmem>>, %arg6: memref<4x4xf32, #tpu.memory_space<vmem>>, %arg7: memref<4x1xf32, #tpu.memory_space<vmem>>, %arg8: memref<4x1xf32, #tpu.memory_space<vmem>>, %arg9: memref<168x168xf32, #tpu.memory_space<vmem>>, %arg10: memref<1x168xf32, #tpu.memory_space<vmem>>, %arg11: memref<168x70xf32, #tpu.memory_space<vmem>>, %arg12: memref<1x70xf32, #tpu.memory_space<vmem>>, %arg13: memref<2x1x70xf32, #tpu.memory_space<vmem>>) attributes {dimension_semantics = [#tpu.dimension_semantics<parallel>], iteration_bounds = array<i64: 1>, scalar_prefetch = 0 : i64, scratch_operands = 0 : i64, tpu.core_type = #tpu.core_type<tc>, window_params = [{transform_indices = @transform_0, window_bounds = array<i64: 2, 4, 192>}, {pipeline_mode = #tpu.pipeline_mode<synchronous>, transform_indices = @transform_1, window_bounds = array<i64: 4, 12>}, {pipeline_mode = #tpu.pipeline_mode<synchronous>, transform_indices = @transform_2, window_bounds = array<i64: 4, 1>}, {pipeline_mode = #tpu.pipeline_mode<synchronous>, transform_indices = @transform_3, window_bounds = array<i64: 4, 12>}, {pipeline_mode = #tpu.pipeline_mode<synchronous>, transform_indices = @transform_4, window_bounds = array<i64: 4, 1>}, {pipeline_mode = #tpu.pipeline_mode<synchronous>, transform_indices = @transform_5, window_bounds = array<i64: 4, 4>}, {pipeline_mode = #tpu.pipeline_mode<synchronous>, transform_indices = @transform_6, window_bounds = array<i64: 4, 1>}, {pipeline_mode = #tpu.pipeline_mode<synchronous>, transform_indices = @transform_7, window_bounds = array<i64: 4, 1>}, {pipeline_mode = #tpu.pipeline_mode<synchronous>, transform_indices = @transform_8, window_bounds = array<i64: 168, 168>}, {pipeline_mode = #tpu.pipeline_mode<synchronous>, transform_indices = @transform_9, window_bounds = array<i64: 1, 168>}, {pipeline_mode = #tpu.pipeline_mode<synchronous>, transform_indices = @transform_10, window_bounds = array<i64: 168, 70>}, {pipeline_mode = #tpu.pipeline_mode<synchronous>, transform_indices = @transform_11, window_bounds = array<i64: 1, 70>}, {transform_indices = @transform_12, window_bounds = array<i64: 2, 1, 70>}]} {
    %c0 = arith.constant 0 : index
    %c0_0 = arith.constant 0 : index
    %c0_1 = arith.constant 0 : index
    %0 = vector.load %arg1[%c0, %c0_0, %c0_1] : memref<2x4x192xf32, #tpu.memory_space<vmem>>, vector<1x4x192xf32>
    %1 = vector.shape_cast %0 : vector<1x4x192xf32> to vector<4x192xf32>
    %2 = vector.extract_strided_slice %1 {offsets = [0, 0], sizes = [4, 168], strides = [1, 1]} : vector<4x192xf32> to vector<4x168xf32>
    %3 = vector.extract_strided_slice %1 {offsets = [0, 12], sizes = [4, 168], strides = [1, 1]} : vector<4x192xf32> to vector<4x168xf32>
    %4 = vector.extract_strided_slice %1 {offsets = [0, 24], sizes = [4, 168], strides = [1, 1]} : vector<4x192xf32> to vector<4x168xf32>
    %5 = tpu.concatenate %2, %3, %4 in 0 : vector<4x168xf32>, vector<4x168xf32>, vector<4x168xf32> -> vector<12x168xf32>
    %c0_2 = arith.constant 0 : index
    %c0_3 = arith.constant 0 : index
    %6 = vector.load %arg2[%c0_2, %c0_3] : memref<4x12xf32, #tpu.memory_space<vmem>>, vector<4x12xf32>
    %cst = arith.constant dense<0.000000e+00> : vector<4x168xf32>
    %7 = tpu.matmul %6, %5, %cst {dimension_numbers = #tpu.dot_dimension_numbers<[1], [0], [0], [1], [0, 0, 1, 1], [], []>} : vector<4x12xf32>, vector<12x168xf32>, vector<4x168xf32> -> vector<4x168xf32>
    %c0_4 = arith.constant 0 : index
    %c0_5 = arith.constant 0 : index
    %8 = vector.load %arg3[%c0_4, %c0_5] : memref<4x1xf32, #tpu.memory_space<vmem>>, vector<4x1xf32>
    %9 = vector.broadcast %8 : vector<4x1xf32> to vector<4x168xf32>
    %10 = arith.addf %7, %9 : vector<4x168xf32>
    %c0_6 = arith.constant 0 : index
    %c0_7 = arith.constant 0 : index
    %11 = vector.load %arg4[%c0_6, %c0_7] : memref<4x12xf32, #tpu.memory_space<vmem>>, vector<4x12xf32>
    %cst_8 = arith.constant dense<0.000000e+00> : vector<4x168xf32>
    %12 = tpu.matmul %11, %5, %cst_8 {dimension_numbers = #tpu.dot_dimension_numbers<[1], [0], [0], [1], [0, 0, 1, 1], [], []>} : vector<4x12xf32>, vector<12x168xf32>, vector<4x168xf32> -> vector<4x168xf32>
    %c0_9 = arith.constant 0 : index
    %c0_10 = arith.constant 0 : index
    %13 = vector.load %arg5[%c0_9, %c0_10] : memref<4x1xf32, #tpu.memory_space<vmem>>, vector<4x1xf32>
    %14 = vector.broadcast %13 : vector<4x1xf32> to vector<4x168xf32>
    %15 = arith.addf %12, %14 : vector<4x168xf32>
    %cst_11 = arith.constant 5.000000e-01 : f32
    %16 = vector.broadcast %cst_11 : f32 to vector<4x168xf32>
    %17 = arith.mulf %16, %15 : vector<4x168xf32>
    %18 = math.tanh %17 : vector<4x168xf32>
    %cst_12 = arith.constant 5.000000e-01 : f32
    %19 = vector.broadcast %cst_12 : f32 to vector<4x168xf32>
    %20 = arith.mulf %19, %18 : vector<4x168xf32>
    %cst_13 = arith.constant 5.000000e-01 : f32
    %21 = vector.broadcast %cst_13 : f32 to vector<4x168xf32>
    %22 = arith.addf %20, %21 : vector<4x168xf32>
    %23 = arith.mulf %10, %22 : vector<4x168xf32>
    %c0_14 = arith.constant 0 : index
    %c0_15 = arith.constant 0 : index
    %24 = vector.load %arg6[%c0_14, %c0_15] : memref<4x4xf32, #tpu.memory_space<vmem>>, vector<4x4xf32>
    %cst_16 = arith.constant dense<0.000000e+00> : vector<4x168xf32>
    %25 = tpu.matmul %24, %23, %cst_16 {dimension_numbers = #tpu.dot_dimension_numbers<[1], [0], [0], [1], [0, 0, 1, 1], [], []>} : vector<4x4xf32>, vector<4x168xf32>, vector<4x168xf32> -> vector<4x168xf32>
    %c0_17 = arith.constant 0 : index
    %c0_18 = arith.constant 0 : index
    %26 = vector.load %arg7[%c0_17, %c0_18] : memref<4x1xf32, #tpu.memory_space<vmem>>, vector<4x1xf32>
    %27 = vector.broadcast %26 : vector<4x1xf32> to vector<4x168xf32>
    %28 = arith.addf %25, %27 : vector<4x168xf32>
    %cst_19 = arith.constant 5.000000e-01 : f32
    %29 = vector.broadcast %cst_19 : f32 to vector<4x168xf32>
    %30 = arith.mulf %29, %28 : vector<4x168xf32>
    %31 = math.tanh %30 : vector<4x168xf32>
    %cst_20 = arith.constant 5.000000e-01 : f32
    %32 = vector.broadcast %cst_20 : f32 to vector<4x168xf32>
    %33 = arith.mulf %32, %31 : vector<4x168xf32>
    %cst_21 = arith.constant 5.000000e-01 : f32
    %34 = vector.broadcast %cst_21 : f32 to vector<4x168xf32>
    %35 = arith.addf %33, %34 : vector<4x168xf32>
    %c0_22 = arith.constant 0 : index
    %c0_23 = arith.constant 0 : index
    %36 = vector.load %arg8[%c0_22, %c0_23] : memref<4x1xf32, #tpu.memory_space<vmem>>, vector<4x1xf32>
    %37 = vector.broadcast %36 : vector<4x1xf32> to vector<4x168xf32>
    %38 = arith.mulf %35, %37 : vector<4x168xf32>
    %cst_24 = arith.constant dense<0.000000e+00> : vector<168xf32>
    %39 = vector.multi_reduction <add>, %38, %cst_24 [0] : vector<4x168xf32> to vector<168xf32>
    %40 = vector.shape_cast %39 : vector<168xf32> to vector<1x168xf32>
    %c0_25 = arith.constant 0 : index
    %c0_26 = arith.constant 0 : index
    %41 = vector.load %arg9[%c0_25, %c0_26] : memref<168x168xf32, #tpu.memory_space<vmem>>, vector<168x168xf32>
    %cst_27 = arith.constant dense<0.000000e+00> : vector<1x168xf32>
    %42 = tpu.matmul %40, %41, %cst_27 {dimension_numbers = #tpu.dot_dimension_numbers<[1], [0], [0], [1], [0, 0, 1, 1], [], []>} : vector<1x168xf32>, vector<168x168xf32>, vector<1x168xf32> -> vector<1x168xf32>
    %c0_28 = arith.constant 0 : index
    %c0_29 = arith.constant 0 : index
    %43 = vector.load %arg10[%c0_28, %c0_29] : memref<1x168xf32, #tpu.memory_space<vmem>>, vector<1x168xf32>
    %44 = arith.addf %42, %43 : vector<1x168xf32>
    %cst_30 = arith.constant 0.000000e+00 : f32
    %45 = vector.broadcast %cst_30 : f32 to vector<1x168xf32>
    %46 = arith.cmpf oge, %44, %45 : vector<1x168xf32>
    %cst_31 = arith.constant 0.00999999977 : f32
    %47 = vector.broadcast %cst_31 : f32 to vector<1x168xf32>
    %48 = arith.mulf %47, %44 : vector<1x168xf32>
    %49 = arith.select %46, %44, %48 : vector<1x168xi1>, vector<1x168xf32>
    %c0_32 = arith.constant 0 : index
    %c0_33 = arith.constant 0 : index
    %50 = vector.load %arg11[%c0_32, %c0_33] : memref<168x70xf32, #tpu.memory_space<vmem>>, vector<168x70xf32>
    %cst_34 = arith.constant dense<0.000000e+00> : vector<1x70xf32>
    %51 = tpu.matmul %49, %50, %cst_34 {dimension_numbers = #tpu.dot_dimension_numbers<[1], [0], [0], [1], [0, 0, 1, 1], [], []>} : vector<1x168xf32>, vector<168x70xf32>, vector<1x70xf32> -> vector<1x70xf32>
    %c0_35 = arith.constant 0 : index
    %c0_36 = arith.constant 0 : index
    %52 = vector.load %arg12[%c0_35, %c0_36] : memref<1x70xf32, #tpu.memory_space<vmem>>, vector<1x70xf32>
    %53 = arith.addf %51, %52 : vector<1x70xf32>
    %c0_37 = arith.constant 0 : index
    %c0_38 = arith.constant 0 : index
    %c0_39 = arith.constant 0 : index
    %54 = vector.load %arg13[%c0_37, %c0_38, %c0_39] : memref<2x1x70xf32, #tpu.memory_space<vmem>>, vector<1x1x70xf32>
    %55 = vector.shape_cast %54 : vector<1x1x70xf32> to vector<1x70xf32>
    %56 = vector.shape_cast %53 : vector<1x70xf32> to vector<1x1x70xf32>
    tpu.vector_store %arg13[%c0_37, %c0_38, %c0_39], %56 {strides = array<i32>} : memref<2x1x70xf32, #tpu.memory_space<vmem>>, vector<1x1x70xf32>,
    %c1 = arith.constant 1 : index
    %c0_40 = arith.constant 0 : index
    %c0_41 = arith.constant 0 : index
    %57 = vector.load %arg1[%c1, %c0_40, %c0_41] : memref<2x4x192xf32, #tpu.memory_space<vmem>>, vector<1x4x192xf32>
    %58 = vector.shape_cast %57 : vector<1x4x192xf32> to vector<4x192xf32>
    %59 = vector.extract_strided_slice %58 {offsets = [0, 0], sizes = [4, 168], strides = [1, 1]} : vector<4x192xf32> to vector<4x168xf32>
    %60 = vector.extract_strided_slice %58 {offsets = [0, 12], sizes = [4, 168], strides = [1, 1]} : vector<4x192xf32> to vector<4x168xf32>
    %61 = vector.extract_strided_slice %58 {offsets = [0, 24], sizes = [4, 168], strides = [1, 1]} : vector<4x192xf32> to vector<4x168xf32>
    %62 = tpu.concatenate %59, %60, %61 in 0 : vector<4x168xf32>, vector<4x168xf32>, vector<4x168xf32> -> vector<12x168xf32>
    %c0_42 = arith.constant 0 : index
    %c0_43 = arith.constant 0 : index
    %63 = vector.load %arg2[%c0_42, %c0_43] : memref<4x12xf32, #tpu.memory_space<vmem>>, vector<4x12xf32>
    %cst_44 = arith.constant dense<0.000000e+00> : vector<4x168xf32>
    %64 = tpu.matmul %63, %62, %cst_44 {dimension_numbers = #tpu.dot_dimension_numbers<[1], [0], [0], [1], [0, 0, 1, 1], [], []>} : vector<4x12xf32>, vector<12x168xf32>, vector<4x168xf32> -> vector<4x168xf32>
    %c0_45 = arith.constant 0 : index
    %c0_46 = arith.constant 0 : index
    %65 = vector.load %arg3[%c0_45, %c0_46] : memref<4x1xf32, #tpu.memory_space<vmem>>, vector<4x1xf32>
    %66 = vector.broadcast %65 : vector<4x1xf32> to vector<4x168xf32>
    %67 = arith.addf %64, %66 : vector<4x168xf32>
    %c0_47 = arith.constant 0 : index
    %c0_48 = arith.constant 0 : index
    %68 = vector.load %arg4[%c0_47, %c0_48] : memref<4x12xf32, #tpu.memory_space<vmem>>, vector<4x12xf32>
    %cst_49 = arith.constant dense<0.000000e+00> : vector<4x168xf32>
    %69 = tpu.matmul %68, %62, %cst_49 {dimension_numbers = #tpu.dot_dimension_numbers<[1], [0], [0], [1], [0, 0, 1, 1], [], []>} : vector<4x12xf32>, vector<12x168xf32>, vector<4x168xf32> -> vector<4x168xf32>
    %c0_50 = arith.constant 0 : index
    %c0_51 = arith.constant 0 : index
    %70 = vector.load %arg5[%c0_50, %c0_51] : memref<4x1xf32, #tpu.memory_space<vmem>>, vector<4x1xf32>
    %71 = vector.broadcast %70 : vector<4x1xf32> to vector<4x168xf32>
    %72 = arith.addf %69, %71 : vector<4x168xf32>
    %cst_52 = arith.constant 5.000000e-01 : f32
    %73 = vector.broadcast %cst_52 : f32 to vector<4x168xf32>
    %74 = arith.mulf %73, %72 : vector<4x168xf32>
    %75 = math.tanh %74 : vector<4x168xf32>
    %cst_53 = arith.constant 5.000000e-01 : f32
    %76 = vector.broadcast %cst_53 : f32 to vector<4x168xf32>
    %77 = arith.mulf %76, %75 : vector<4x168xf32>
    %cst_54 = arith.constant 5.000000e-01 : f32
    %78 = vector.broadcast %cst_54 : f32 to vector<4x168xf32>
    %79 = arith.addf %77, %78 : vector<4x168xf32>
    %80 = arith.mulf %67, %79 : vector<4x168xf32>
    %c0_55 = arith.constant 0 : index
    %c0_56 = arith.constant 0 : index
    %81 = vector.load %arg6[%c0_55, %c0_56] : memref<4x4xf32, #tpu.memory_space<vmem>>, vector<4x4xf32>
    %cst_57 = arith.constant dense<0.000000e+00> : vector<4x168xf32>
    %82 = tpu.matmul %81, %80, %cst_57 {dimension_numbers = #tpu.dot_dimension_numbers<[1], [0], [0], [1], [0, 0, 1, 1], [], []>} : vector<4x4xf32>, vector<4x168xf32>, vector<4x168xf32> -> vector<4x168xf32>
    %c0_58 = arith.constant 0 : index
    %c0_59 = arith.constant 0 : index
    %83 = vector.load %arg7[%c0_58, %c0_59] : memref<4x1xf32, #tpu.memory_space<vmem>>, vector<4x1xf32>
    %84 = vector.broadcast %83 : vector<4x1xf32> to vector<4x168xf32>
    %85 = arith.addf %82, %84 : vector<4x168xf32>
    %cst_60 = arith.constant 5.000000e-01 : f32
    %86 = vector.broadcast %cst_60 : f32 to vector<4x168xf32>
    %87 = arith.mulf %86, %85 : vector<4x168xf32>
    %88 = math.tanh %87 : vector<4x168xf32>
    %cst_61 = arith.constant 5.000000e-01 : f32
    %89 = vector.broadcast %cst_61 : f32 to vector<4x168xf32>
    %90 = arith.mulf %89, %88 : vector<4x168xf32>
    %cst_62 = arith.constant 5.000000e-01 : f32
    %91 = vector.broadcast %cst_62 : f32 to vector<4x168xf32>
    %92 = arith.addf %90, %91 : vector<4x168xf32>
    %c0_63 = arith.constant 0 : index
    %c0_64 = arith.constant 0 : index
    %93 = vector.load %arg8[%c0_63, %c0_64] : memref<4x1xf32, #tpu.memory_space<vmem>>, vector<4x1xf32>
    %94 = vector.broadcast %93 : vector<4x1xf32> to vector<4x168xf32>
    %95 = arith.mulf %92, %94 : vector<4x168xf32>
    %cst_65 = arith.constant dense<0.000000e+00> : vector<168xf32>
    %96 = vector.multi_reduction <add>, %95, %cst_65 [0] : vector<4x168xf32> to vector<168xf32>
    %97 = vector.shape_cast %96 : vector<168xf32> to vector<1x168xf32>
    %c0_66 = arith.constant 0 : index
    %c0_67 = arith.constant 0 : index
    %98 = vector.load %arg9[%c0_66, %c0_67] : memref<168x168xf32, #tpu.memory_space<vmem>>, vector<168x168xf32>
    %cst_68 = arith.constant dense<0.000000e+00> : vector<1x168xf32>
    %99 = tpu.matmul %97, %98, %cst_68 {dimension_numbers = #tpu.dot_dimension_numbers<[1], [0], [0], [1], [0, 0, 1, 1], [], []>} : vector<1x168xf32>, vector<168x168xf32>, vector<1x168xf32> -> vector<1x168xf32>
    %c0_69 = arith.constant 0 : index
    %c0_70 = arith.constant 0 : index
    %100 = vector.load %arg10[%c0_69, %c0_70] : memref<1x168xf32, #tpu.memory_space<vmem>>, vector<1x168xf32>
    %101 = arith.addf %99, %100 : vector<1x168xf32>
    %cst_71 = arith.constant 0.000000e+00 : f32
    %102 = vector.broadcast %cst_71 : f32 to vector<1x168xf32>
    %103 = arith.cmpf oge, %101, %102 : vector<1x168xf32>
    %cst_72 = arith.constant 0.00999999977 : f32
    %104 = vector.broadcast %cst_72 : f32 to vector<1x168xf32>
    %105 = arith.mulf %104, %101 : vector<1x168xf32>
    %106 = arith.select %103, %101, %105 : vector<1x168xi1>, vector<1x168xf32>
    %c0_73 = arith.constant 0 : index
    %c0_74 = arith.constant 0 : index
    %107 = vector.load %arg11[%c0_73, %c0_74] : memref<168x70xf32, #tpu.memory_space<vmem>>, vector<168x70xf32>
    %cst_75 = arith.constant dense<0.000000e+00> : vector<1x70xf32>
    %108 = tpu.matmul %106, %107, %cst_75 {dimension_numbers = #tpu.dot_dimension_numbers<[1], [0], [0], [1], [0, 0, 1, 1], [], []>} : vector<1x168xf32>, vector<168x70xf32>, vector<1x70xf32> -> vector<1x70xf32>
    %c0_76 = arith.constant 0 : index
    %c0_77 = arith.constant 0 : index
    %109 = vector.load %arg12[%c0_76, %c0_77] : memref<1x70xf32, #tpu.memory_space<vmem>>, vector<1x70xf32>
    %110 = arith.addf %108, %109 : vector<1x70xf32>
    %c1_78 = arith.constant 1 : index
    %c0_79 = arith.constant 0 : index
    %c0_80 = arith.constant 0 : index
    %111 = vector.load %arg13[%c1_78, %c0_79, %c0_80] : memref<2x1x70xf32, #tpu.memory_space<vmem>>, vector<1x1x70xf32>
    %112 = vector.shape_cast %111 : vector<1x1x70xf32> to vector<1x70xf32>
    %113 = vector.shape_cast %110 : vector<1x70xf32> to vector<1x1x70xf32>
    tpu.vector_store %arg13[%c1_78, %c0_79, %c0_80], %113 {strides = array<i32>} : memref<2x1x70xf32, #tpu.memory_space<vmem>>, vector<1x1x70xf32>,
    return
  }
  func.func @transform_0(%arg0: i32) -> (i32, i32, i32) {
    %c0_i32 = arith.constant 0 : i32
    %c0_i32_0 = arith.constant 0 : i32
    %c0_i32_1 = arith.constant 0 : i32
    return %arg0, %c0_i32, %c0_i32_0 : i32, i32, i32
  }
  func.func @transform_1(%arg0: i32) -> (i32, i32) {
    %c0_i32 = arith.constant 0 : i32
    %c0_i32_0 = arith.constant 0 : i32
    %c0_i32_1 = arith.constant 0 : i32
    return %c0_i32, %c0_i32_0 : i32, i32
  }
  func.func @transform_2(%arg0: i32) -> (i32, i32) {
    %c0_i32 = arith.constant 0 : i32
    %c0_i32_0 = arith.constant 0 : i32
    %c0_i32_1 = arith.constant 0 : i32
    return %c0_i32, %c0_i32_0 : i32, i32
  }
  func.func @transform_3(%arg0: i32) -> (i32, i32) {
    %c0_i32 = arith.constant 0 : i32
    %c0_i32_0 = arith.constant 0 : i32
    %c0_i32_1 = arith.constant 0 : i32
    return %c0_i32, %c0_i32_0 : i32, i32
  }
  func.func @transform_4(%arg0: i32) -> (i32, i32) {
    %c0_i32 = arith.constant 0 : i32
    %c0_i32_0 = arith.constant 0 : i32
    %c0_i32_1 = arith.constant 0 : i32
    return %c0_i32, %c0_i32_0 : i32, i32
  }
  func.func @transform_5(%arg0: i32) -> (i32, i32) {
    %c0_i32 = arith.constant 0 : i32
    %c0_i32_0 = arith.constant 0 : i32
    %c0_i32_1 = arith.constant 0 : i32
    return %c0_i32, %c0_i32_0 : i32, i32
  }
  func.func @transform_6(%arg0: i32) -> (i32, i32) {
    %c0_i32 = arith.constant 0 : i32
    %c0_i32_0 = arith.constant 0 : i32
    %c0_i32_1 = arith.constant 0 : i32
    return %c0_i32, %c0_i32_0 : i32, i32
  }
  func.func @transform_7(%arg0: i32) -> (i32, i32) {
    %c0_i32 = arith.constant 0 : i32
    %c0_i32_0 = arith.constant 0 : i32
    %c0_i32_1 = arith.constant 0 : i32
    return %c0_i32, %c0_i32_0 : i32, i32
  }
  func.func @transform_8(%arg0: i32) -> (i32, i32) {
    %c0_i32 = arith.constant 0 : i32
    %c0_i32_0 = arith.constant 0 : i32
    %c0_i32_1 = arith.constant 0 : i32
    return %c0_i32, %c0_i32_0 : i32, i32
  }
  func.func @transform_9(%arg0: i32) -> (i32, i32) {
    %c0_i32 = arith.constant 0 : i32
    %c0_i32_0 = arith.constant 0 : i32
    %c0_i32_1 = arith.constant 0 : i32
    return %c0_i32, %c0_i32_0 : i32, i32
  }
  func.func @transform_10(%arg0: i32) -> (i32, i32) {
    %c0_i32 = arith.constant 0 : i32
    %c0_i32_0 = arith.constant 0 : i32
    %c0_i32_1 = arith.constant 0 : i32
    return %c0_i32, %c0_i32_0 : i32, i32
  }
  func.func @transform_11(%arg0: i32) -> (i32, i32) {
    %c0_i32 = arith.constant 0 : i32
    %c0_i32_0 = arith.constant 0 : i32
    %c0_i32_1 = arith.constant 0 : i32
    return %c0_i32, %c0_i32_0 : i32, i32
  }
  func.func @transform_12(%arg0: i32) -> (i32, i32, i32) {
    %c0_i32 = arith.constant 0 : i32
    %c0_i32_0 = arith.constant 0 : i32
    %c0_i32_1 = arith.constant 0 : i32
    return %arg0, %c0_i32, %c0_i32_0 : i32, i32, i32
  }
}

</mosaic_0001>

<bundles_post_ra>
// kernel: tpu_custom_call.1
= control target key start
LH: loop header
LB: loop body
LE: loop exit
PB: predicated region body
PF: predicated region fallthrough
CT: control target
= control target key end

     0   :  { %17 = vsyncpa [#allocation3], 0  ;;  %s2062_s0 = inlined_call_operand.vmem [shape: f32[2,4,192], index: 0, kind: input, shape index: {}]   ;;  %s2063_s1 = inlined_call_operand.vmem [shape: f32[4,12], index: 1, kind: input, shape index: {}]   ;;  %s2064_s2 = inlined_call_operand.vmem [shape: f32[4,1], index: 2, kind: input, shape index: {}]   ;;  %s2065_s3 = inlined_call_operand.vmem [shape: f32[4,12], index: 3, kind: input, shape index: {}]   ;;  %s2066_s4 = inlined_call_operand.vmem [shape: f32[4,1], index: 4, kind: input, shape index: {}]   ;;  %s2067_s5 = inlined_call_operand.hbm [shape: f32[4,4], index: 5, kind: input, shape index: {}]   ;;  %s2068_s6 = inlined_call_operand.vmem [shape: f32[4,1], index: 6, kind: input, shape index: {}]   ;;  %s2069_s7 = inlined_call_operand.vmem [shape: f32[4,1], index: 7, kind: input, shape index: {}]   ;;  %s2070_s8 = inlined_call_operand.vmem [shape: f32[168,168], index: 8, kind: input, shape index: {}]   ;;  %s2071_s9 = inlined_call_operand.vmem [shape: f32[1,168], index: 9, kind: input, shape index: {}]   ;;  %s2072_s10 = inlined_call_operand.vmem [shape: f32[168,70], index: 10, kind: input, shape index: {}]   ;;  %s2073_s11 = inlined_call_operand.vmem [shape: f32[1,70], index: 11, kind: input, shape index: {}]   ;;  %s2074_s12 = inlined_call_operand.hbm [shape: f32[2,1,70], index: 12, kind: output, shape index: {}]  }
   0x1   :  { %18 = vsyncpa [#allocation4], 0  ;;  %s1452_s21 = smov [#allocation2]   ;;  %s1404_s25 = scalar_lea.hbm %s2067_s5, 64 }
   0x2   :  { %s35_s22 = sshll.u32 %s1452_s21, 4  ;;  %p1405_p0 = scmp.ne.s32.totalorder %s2067_s5, %s1404_s25  ;;  %s36_s22 = int_to_ptr.vmem [resolvable:$true] %s35_s22 }
   0x3   :  { %p1408_p1 = scmp.lt.u32.totalorder %s1404_s25, %s2067_s5 }
   0x5   :  { %p1410_p2 = pnand %p1408_p1, %p1405_p0 }
   0x7   :  { %1413 = shalt.err (!%p1410_p2)
}
   0x8   :  { %s1414_s30 = scalar_lea.vmem %s36_s22, 64  ;;  %p1419_p4 = scmp.lt.s32.totalorder %s36_s22, %s36_s22 }
   0x9   :  { %p1415_p3 = scmp.ne.s32.totalorder %s36_s22, %s1414_s30  ;;  %p1420_p5 = scmp.lt.s32.totalorder %s1414_s30, %s1414_s30 }
   0xb   :  { %p1421_p6 = por %p1420_p5, %p1419_p4 }
   0xd   :  { %p1422_p7 = pnand %p1421_p6, %p1415_p3 }
   0xf   :  { %1425 = shalt.err (!%p1422_p7)
}
  0x10   :  { %38 = dma.hbm_to_vmem [thread:$0]  %s2067_s5, 64, %s36_s22, [#allocation3]  }
  0x11   :  { %1448 = dma.done.wait [#allocation3], 64  }
  0x12   :  { %1449 = vsyncadd [#allocation3], 4294967232  ;;  %v54_v0 = vld [vmem:[%s2062_s0] sm:$0xff]  ;;  %v1453_v3 = vmov 0.0   ;;  %s1454_s19 = smov 116   ;;  %v1455_v7 = vmov 0  }
  0x13   :  { %v58_v1 = vcombine.low %v54_v0, %v54_v0  ;;  %v56_v2 = vcombine.high %v54_v0, %v54_v0  ;;  %155 = vmatprep.mubr.f32.mxu0 %v1453_v3  ;;  %236 = vmatprep.mubr.f32.mxu1 %v1453_v3  ;;  %v163_v5 = vld [vmem:[%s2066_s4] sm:$0xf]  ;;  %v1553_v9 = vld [vmem:[%s2062_s0 + $0x8] sm:$0xff]  ;;  %s1456_s23 = smov 104   ;;  %vm63_vm0 = vcmask 949248   ;;  %vm73_vm1 = vcmask 1043456  }
  0x14   :  { %1372 = vset.pattern.permute.xlu1 %v1455_v7  ;;  %1373 = vset.pattern.permute.xlu0 %v1455_v7  ;;  %v77_v8 = vld [vmem:[%s2064_s2] sm:$0xf]  ;;  %v609_v10 = vcombine.low %v1553_v9, %v1553_v9  ;;  %vm71_vm2 = vcmask 850944   ;;  %vm1457_vm3 = vmmov 1   ;;  %vm83_vm5 = vcmask 97280   ;;  %v373_v41 = vld [vmem:[%s2070_s8 + $0x8] sm:$0xff] }
  0x15   :  { %v1362_v4 = vpack.i.bf16 %v54_v0, %v58_v1  ;;  %v1367_v6 = vpack.i.bf16 %v56_v2, %v54_v0  ;;  %166 = vperm.xlu1 %1372, %v163_v5   ;;  %v349_v11 = vld [vmem:[%s2069_s7] sm:$0xf]  ;;  %vm1571_vm4 = vmpackc.low %vm73_vm1, %vm1457_vm3  ;;  %v1608_v38 = vcombine.high %v1553_v9, %v1553_v9  ;;  %v375_v42 = vld [vmem:[%s2070_s8 + $0x18] sm:$0xff]  ;;  %vm260_vm6 = vcmask 31744  }
  0x16   :  { %v1374_v12 = vpack.i.bf16 %v1553_v9, %v609_v10  ;;  %v710_v13 = vld [vmem:[%s2066_s4] sm:$0xf]  ;;  %v1625_v44 = vpack.c.bf16 %v375_v42, %v373_v41  ;;  %v374_v45 = vld [vmem:[%s2070_s8 + $0x10] sm:$0xff]  ;;  %v377_v46 = vld [vmem:[%s2070_s8 + $0x28] sm:$0xff]  ;;  %vm364_vm7 = vcmask 322560   ;;  %vm426_vm8 = vcmask 326656  }
  0x17   :  { %1363 = vrot.lane.b32.xlu0 %v1362_v4, %s1454_s19  ;;  %v801_v14 = vld [vmem:[%s2068_s6] sm:$0xf]  ;;  %v1379_v39 = vpack.i.bf16 %v1608_v38, %v1553_v9  ;;  %v379_v47 = vld [vmem:[%s2070_s8 + $0x38] sm:$0xff]  ;;  %vm602_vm11 = vcmask 565248  }
  0x18   :  { %v76_v28 = vld [vmem:[%s2063_s1] sm:$0xf]  ;;  %v1641_v50 = vpack.c.bf16 %v379_v47, %v377_v46  ;;  %v395_v41 = vld [vmem:[%s2070_s8 + $0xb8] sm:$0xff]  ;;  %v397_v47 = vld [vmem:[%s2070_s8 + $0xc8] sm:$0xff] }
  0x19   :  { %80 = vperm.xlu1 %1372, %v77_v8   ;;  %v162_v29 = vld [vmem:[%s2065_s3] sm:$0xf] }
  0x1a   :  { %v254_v37 = vld [vmem:[%s2068_s6] sm:$0xf] }
  0x1b   :  { %1368 = vrot.lane.b32.xlu0 %v1367_v6, %s1456_s23  ;;  %v625_v40 = vld [vmem:[%s2064_s2] sm:$0xf] }
  0x1c   :  { %v372_v43 = vld [vmem:[%s2070_s8] sm:$0xff] }
  0x1d   :  { %352 = vperm.xlu1 %1372, %v349_v11   ;;  %v895_v48 = vld [vmem:[%s2069_s7] sm:$0xf]  ;;  %v1639_v49 = vpack.c.bf16 %v374_v45, %v372_v43  ;;  %v394_v45 = vld [vmem:[%s2070_s8 + $0xb0] sm:$0xff] }
  0x1e   :  { %v253_v6 = vld [vmem:[#allocation2] sm:$0xf] }
  0x1f   :  { %257 = vperm.xlu0 %1373, %v254_v37   ;;  %v390_v37 = vld [vmem:[%s2070_s8 + $0x90] sm:$0xff]  ;;  %v392_v43 = vld [vmem:[%s2070_s8 + $0xa0] sm:$0xff] }
  0x20   :  { %v1739_v46 = vpack.c.bf16 %v394_v45, %v392_v43  ;;  %v518_v43 = vld [vmem:[%s2072_s10 + $0x58] sm:$0xff]  ;;  %v528_v23 = vld [vmem:[%s2073_s11] sm:$0x1] }
  0x21   :  { %1375 = vrot.lane.b32.xlu1 %v1374_v12, %s1454_s19 }
  0x23   :  { %1380 = vrot.lane.b32.xlu0 %v1379_v39, %s1456_s23 }
  0x25   :  { %713 = vperm.xlu1 %1372, %v710_v13  }
  0x27   :  { %628 = vperm.xlu0 %1373, %v625_v40   ;;  %v393_v40 = vld [vmem:[%s2070_s8 + $0xa8] sm:$0xff] }
  0x28   :  { %v1731_v42 = vpack.c.bf16 %v395_v41, %v393_v40  ;;  %v517_v41 = vld [vmem:[%s2072_s10 + $0x50] sm:$0xff] }
  0x29   :  { %804 = vperm.xlu1 %1372, %v801_v14   ;;  %v1894_v45 = vpack.c.bf16 %v518_v43, %v517_v41 }
  0x2b   :  { %898 = vperm.xlu0 %1373, %v895_v48   ;;  %v399_v48 = vld [vmem:[%s2070_s8 + $0xd8] sm:$0xff] }
  0x89   :  { %v1364_v15 = vpop.permute.xlu0 %1363 }
  0x8a   :  { %v1366_v16 = vunpack.i.h.bf16 %v1364_v15  ;;  %v1365_v17 = vunpack.i.l.bf16 %v1364_v15  ;;  %v376_v15 = vld [vmem:[%s2070_s8 + $0x20] sm:$0xff] }
  0x8c   :  { %v64_v18 = vsel %vm63_vm0, %v1365_v17, %v1366_v16  ;;  %v75_v22 = vsel %vm73_vm1, %v56_v2, %v1366_v16  ;;  %v378_v16 = vld [vmem:[%s2070_s8 + $0x30] sm:$0xff] }
  0x8d   :  { %v1369_v19 = vpop.permute.xlu0 %1368  ;;  %v74_v26 = vsel %vm73_vm1, %v54_v0, %v64_v18  ;;  %v1668_v17 = vpack.c.bf16 %v378_v16, %v376_v15  ;;  %v383_v18 = vld [vmem:[%s2070_s8 + $0x58] sm:$0xff]  ;;  %v1821_v16 = vld [vmem:[%s2070_s8 + $0x148] sm:$0xff] }
  0x8e   :  { %v1371_v20 = vunpack.i.h.bf16 %v1369_v19  ;;  %v1370_v21 = vunpack.i.l.bf16 %v1369_v19 }
  0x90   :  { %v1188_v24 = vpack.c.bf16 %v1371_v20, %v75_v22  ;;  %v72_v25 = vsel %vm71_vm2, %v1370_v21, %v1371_v20  ;;  %v380_v20 = vld [vmem:[%s2070_s8 + $0x40] sm:$0xff]  ;;  %v382_v21 = vld [vmem:[%s2070_s8 + $0x50] sm:$0xff] }
  0x91   :  { %v1191_v27 = vpack.c.bf16 %v72_v25, %v74_v26  ;;  %v1685_v22 = vpack.c.bf16 %v382_v21, %v380_v20  ;;  %v387_v25 = vld [vmem:[%s2070_s8 + $0x78] sm:$0xff] }
  0x92   :  { %1190 = vmatprep.subr.msk.bf16.mxu0 %vm1571_vm4, %v1188_v24  ;;  %1196 = vmatprep.subr.msk.bf16.mxu1 %vm1571_vm4, %v1188_v24  ;;  %v385_v24 = vld [vmem:[%s2070_s8 + $0x68] sm:$0xff]  ;;  %v510_v20 = vld [vmem:[%s2072_s10 + $0x18] sm:$0xff] }
  0x93   :  { %1193 = vmatpush1.bf16.msk.msra.mxu0 %vm1571_vm4, %v1191_v27  ;;  %1199 = vmatpush1.bf16.msk.msra.mxu1 %vm1571_vm4, %v1191_v27  ;;  %v1695_v26 = vpack.c.bf16 %v387_v25, %v385_v24  ;;  %v384_v27 = vld [vmem:[%s2070_s8 + $0x60] sm:$0xff]  ;;  %v512_v25 = vld [vmem:[%s2072_s10 + $0x28] sm:$0xff] }
  0x94   :  { %v167_v30 = vpop.permute.xlu1 %166  ;;  %1201 = vmatprep.subr.bf16.mxu1 %v1625_v44  ;;  %v511_v24 = vld [vmem:[%s2072_s10 + $0x20] sm:$0xff] }
  0x96   :  { %1167 = vmatmul.mubr.msk.f32.vlgmr.msra.gmra.mrb[0].mxu0 %vm83_vm5, %v76_v28  ;;  %1170 = vmatmul.mubr.msk.f32.vlgmr.msra.gmra.mrb[0].mxu1 %vm83_vm5, %v162_v29  ;;  %v386_v28 = vld [vmem:[%s2070_s8 + $0x70] sm:$0xff] }
  0x97   :  { %334 = vmatprep.mubr.f32.mxu0 %v1453_v3  ;;  %1203 = vmatpush1.bf16.msra.mxu1 %v1639_v49  ;;  %v1703_v29 = vpack.c.bf16 %v386_v28, %v384_v27  ;;  %v1864_v27 = vpack.c.bf16 %v512_v25, %v511_v24  ;;  %v513_v28 = vld [vmem:[%s2072_s10 + $0x30] sm:$0xff] }
  0x98   :  { %v81_v31 = vpop.permute.xlu1 %80  ;;  %1205 = vmatprep.subr.bf16.mxu1 %v1641_v50 }
  0x9b   :  { %1207 = vmatpush1.bf16.msra.mxu1 %v1668_v17 }
  0x9c   :  { %v1594_v32 = vpop.permute.xlu1 %352 }
  0x9e   :  { %v1649_v7 = vpop.permute.xlu0 %257 }
  0xa0   :  { %v1596_v33 = vpop.permute.xlu1 %1375 }
  0xa1   :  { %v1378_v34 = vunpack.i.h.bf16 %v1596_v33  ;;  %v1377_v35 = vunpack.i.l.bf16 %v1596_v33  ;;  %v1832_v33 = vld [vmem:[%s2070_s8 + $0x140] sm:$0xff] }
  0xa2   :  { %v1651_v8 = vpop.permute.xlu0 %1380 }
  0xa3   :  { %v614_v36 = vsel %vm63_vm0, %v1377_v35, %v1378_v34  ;;  %v1383_v11 = vunpack.i.h.bf16 %v1651_v8  ;;  %v1382_v12 = vunpack.i.l.bf16 %v1651_v8  ;;  %v623_v15 = vsel %vm73_vm1, %v1608_v38, %v1378_v34  ;;  %v507_v34 = vld [vmem:[%s2072_s10] sm:$0xff]  ;;  %v508_v38 = vld [vmem:[%s2072_s10 + $0x8] sm:$0xff]  ;;  %v509_v8 = vld [vmem:[%s2072_s10 + $0x10] sm:$0xff] }
  0xa4   :  { %v622_v10 = vsel %vm73_vm1, %v1553_v9, %v614_v36  ;;  %v381_v9 = vld [vmem:[%s2070_s8 + $0x48] sm:$0xff]  ;;  %v388_v36 = vld [vmem:[%s2070_s8 + $0x80] sm:$0xff]  ;;  %v1854_v21 = vpack.c.bf16 %v510_v20, %v509_v8 }
  0xa5   :  { %v621_v13 = vsel %vm71_vm2, %v1382_v12, %v1383_v11  ;;  %v1677_v19 = vpack.c.bf16 %v383_v18, %v381_v9  ;;  %v1721_v39 = vpack.c.bf16 %v390_v37, %v388_v36  ;;  %v410_v12 = vld [vmem:[%s2070_s8 + $0x130] sm:$0xff]  ;;  %v1826_v9 = vpack.c.bf16 %v1383_v11, %v623_v15  ;;  %v515_v36 = vld [vmem:[%s2072_s10 + $0x40] sm:$0xff]  ;;  %v516_v37 = vld [vmem:[%s2072_s10 + $0x48] sm:$0xff] }
  0xa6   :  { %v1660_v14 = vpack.c.bf16 %v621_v13, %v622_v10  ;;  %v1458_v11 = vmov 0.0|0.0   ;;  %v1848_v18 = vpack.c.bf16 %v508_v38, %v507_v34  ;;  %v1884_v40 = vpack.c.bf16 %v516_v37, %v515_v36 }
  0xa7   :  { %1209 = vmatprep.subr.bf16.mxu1 %v1677_v19 }
  0xa8   :  { %1211 = vmatpush1.bf16.msra.mxu1 %v1685_v22 }
  0xa9   :  { %1213 = vmatprep.subr.bf16.mxu1 %v1695_v26 }
  0xac   :  { %1215 = vmatpush1.bf16.msra.mxu1 %v1703_v29 }
 0x169   :  { %v157_v51 = vpop.f32.mrb[0].mxu0  ;;  %v238_v52 = vpop.f32.mrb[0].mxu1 }
 0x16a   :  { %v239_v53 = vadd.f32 %v238_v52, %v167_v30  ;;  %v159_v54 = vpop.f32.mrb[1].mxu0  ;;  %v240_v55 = vpop.f32.mrb[1].mxu1  ;;  %v158_v63 = vadd.f32 %v157_v51, %v81_v31  ;;  %v1749_v51 = vpack.c.bf16 %v399_v48, %v397_v47  ;;  %v396_v52 = vld [vmem:[%s2070_s8 + $0xc0] sm:$0xff]  ;;  %v520_v48 = vld [vmem:[%s2072_s10 + $0x68] sm:$0xff] }
 0x16b   :  { %v241_v56 = vadd.f32 %v240_v55, %v167_v30  ;;  %v160_v1 = vadd.f32 %v159_v54, %v81_v31  ;;  %v389_v30 = vld [vmem:[%s2070_s8 + $0x88] sm:$0xff]  ;;  %v391_v31 = vld [vmem:[%s2070_s8 + $0x98] sm:$0xff]  ;;  %v519_v47 = vld [vmem:[%s2072_s10 + $0x60] sm:$0xff] }
 0x16c   :  { %v243_v57 = vmul.f32 0.5, %v239_v53  ;;  %v1713_v35 = vpack.c.bf16 %v391_v31, %v389_v30  ;;  %v398_v53 = vld [vmem:[%s2070_s8 + $0xd0] sm:$0xff]  ;;  %v401_v55 = vld [vmem:[%s2070_s8 + $0xe8] sm:$0xff]  ;;  %v514_v30 = vld [vmem:[%s2072_s10 + $0x38] sm:$0xff] }
 0x16d   :  { %v244_v58 = vmul.f32 0.5, %v241_v56  ;;  %v1757_v54 = vpack.c.bf16 %v398_v53, %v396_v52  ;;  %v403_v56 = vld [vmem:[%s2070_s8 + $0xf8] sm:$0xff]  ;;  %v1874_v31 = vpack.c.bf16 %v514_v30, %v513_v28  ;;  %v1904_v52 = vpack.c.bf16 %v520_v48, %v519_v47  ;;  %v521_v53 = vld [vmem:[%s2072_s10 + $0x70] sm:$0xff] }
 0x16e   :  { %1388 = vtanh.f32 %v243_v57  ;;  %1217 = vmatprep.subr.bf16.mxu1 %v1713_v35  ;;  %v1767_v57 = vpack.c.bf16 %v403_v56, %v401_v55  ;;  %v522_v55 = vld [vmem:[%s2072_s10 + $0x78] sm:$0xff] }
 0x16f   :  { %1390 = vtanh.f32 %v244_v58  ;;  %1219 = vmatpush1.bf16.msra.mxu1 %v1721_v39  ;;  %v400_v58 = vld [vmem:[%s2070_s8 + $0xe0] sm:$0xff]  ;;  %v1914_v56 = vpack.c.bf16 %v522_v55, %v521_v53 }
 0x170   :  { %1221 = vmatprep.subr.bf16.mxu1 %v1731_v42 }
 0x173   :  { %1223 = vmatpush1.bf16.msra.mxu1 %v1739_v46 }
 0x174   :  { %1225 = vmatprep.subr.bf16.mxu1 %v1749_v51 }
 0x177   :  { %1227 = vmatpush1.bf16.msra.mxu1 %v1757_v54 }
 0x178   :  { %v1389_v59 = vpop.eup %1388  ;;  %1229 = vmatprep.subr.bf16.mxu1 %v1767_v57 }
 0x179   :  { %v1391_v60 = vpop.eup %1390  ;;  %v247_v61 = vmul.f32 0.5, %v1389_v59  ;;  %v402_v59 = vld [vmem:[%s2070_s8 + $0xf0] sm:$0xff] }
 0x17a   :  { %v248_v62 = vmul.f32 0.5, %v1391_v60  ;;  %v1775_v60 = vpack.c.bf16 %v402_v59, %v400_v58  ;;  %v523_v58 = vld [vmem:[%s2072_s10 + $0x80] sm:$0xff]  ;;  %v524_v59 = vld [vmem:[%s2072_s10 + $0x88] sm:$0xff] }
 0x17b   :  { %v249_v0 = vadd.f32 0.5, %v247_v61  ;;  %v405_v61 = vld [vmem:[%s2070_s8 + $0x108] sm:$0xff] }
 0x17c   :  { %v250_v2 = vadd.f32 0.5, %v248_v62  ;;  %1231 = vmatpush1.bf16.msra.mxu1 %v1775_v60  ;;  %v407_v62 = vld [vmem:[%s2070_s8 + $0x118] sm:$0xff] }
 0x17d   :  { %v251_v4 = vmul.f32 %v249_v0, %v158_v63  ;;  %v1785_v63 = vpack.c.bf16 %v407_v62, %v405_v61  ;;  %v404_v0 = vld [vmem:[%s2070_s8 + $0x100] sm:$0xff]  ;;  %v1924_v61 = vpack.c.bf16 %v524_v59, %v523_v58 }
 0x17e   :  { %v252_v5 = vmul.f32 %v250_v2, %v160_v1  ;;  %v406_v1 = vld [vmem:[%s2070_s8 + $0x110] sm:$0xff] }
 0x17f   :  { %v1793_v2 = vpack.c.bf16 %v406_v1, %v404_v0  ;;  %1233 = vmatprep.subr.bf16.mxu1 %v1785_v63 }
 0x180   :  { %1171 = vmatprep.subr.msk.mxu0 %vm73_vm1, %v252_v5  ;;  %v411_v5 = vld [vmem:[%s2070_s8 + $0x138] sm:$0xff] }
 0x181   :  { %1172 = vmatpush1.msk.msra.mxu0 %vm73_vm1, %v251_v4  ;;  %v409_v4 = vld [vmem:[%s2070_s8 + $0x128] sm:$0xff]  ;;  %1235 = vmatpush1.bf16.msra.mxu1 %v1793_v2 }
 0x182   :  { %1173 = vmatmul.mubr.msk.f32.vlgmr.msra.gmra.mrb[2].mxu0 %vm260_vm6, %v253_v6  ;;  %v408_v6 = vld [vmem:[%s2070_s8 + $0x120] sm:$0xff]  ;;  %v1805_v10 = vpack.c.bf16 %v411_v5, %v409_v4  ;;  %1240 = vmatprep.subr.bf16.mxu0 %v1458_v11 }
 0x183   :  { %v1811_v13 = vpack.c.bf16 %v410_v12, %v408_v6  ;;  %1242 = vmatpush1.bf16.msra.mxu0 %v1848_v18 }
 0x184   :  { %1237 = vmatprep.subr.bf16.mxu1 %v1805_v10  ;;  %1243 = vmatprep.subr.bf16.mxu0 %v1458_v11 }
 0x185   :  { %1239 = vmatpush1.bf16.msra.mxu1 %v1811_v13 }
 0x186   :  { %470 = vmatprep.subr.mxu1 %v1821_v16 }
 0x187   :  { %1245 = vmatpush1.bf16.msra.mxu0 %v1854_v21 }
 0x188   :  { %1246 = vmatprep.subr.bf16.mxu0 %v1458_v11 }
 0x189   :  { %471 = vmatpush1.msra.mxu1 %v1832_v33 }
 0x18a   :  { %1272 = vmatprep.subr.msk.bf16.mxu1 %vm1571_vm4, %v1826_v9 }
 0x18b   :  { %1248 = vmatpush1.bf16.msra.mxu0 %v1864_v27 }
 0x18c   :  { %1249 = vmatprep.subr.bf16.mxu0 %v1458_v11 }
 0x18f   :  { %1251 = vmatpush1.bf16.msra.mxu0 %v1874_v31 }
 0x190   :  { %1252 = vmatprep.subr.bf16.mxu0 %v1458_v11 }
 0x193   :  { %1254 = vmatpush1.bf16.msra.mxu0 %v1884_v40 }
 0x194   :  { %1255 = vmatprep.subr.bf16.mxu0 %v1458_v11 }
 0x197   :  { %1257 = vmatpush1.bf16.msra.mxu0 %v1894_v45 }
 0x198   :  { %1258 = vmatprep.subr.bf16.mxu0 %v1458_v11 }
 0x19b   :  { %1260 = vmatpush1.bf16.msra.mxu0 %v1904_v52 }
 0x19c   :  { %1261 = vmatprep.subr.bf16.mxu0 %v1458_v11 }
 0x19f   :  { %1263 = vmatpush1.bf16.msra.mxu0 %v1914_v56 }
 0x1a0   :  { %1264 = vmatprep.subr.bf16.mxu0 %v1458_v11 }
 0x1a3   :  { %1266 = vmatpush1.bf16.msra.mxu0 %v1924_v61 }
 0x1a4   :  { %1267 = vmatprep.subr.bf16.mxu0 %v1458_v11 }
 0x255   :  { %v336_v62 = vpop.f32.mrb[2].mxu0 }
 0x256   :  { %v337_v0 = vadd.f32 %v336_v62, %v1649_v7  ;;  %v338_v1 = vpop.f32.mrb[3].mxu0 }
 0x257   :  { %v339_v4 = vadd.f32 %v338_v1, %v1649_v7  ;;  %v526_v1 = vld [vmem:[%s2072_s10 + $0x98] sm:$0xff] }
 0x258   :  { %v341_v5 = vmul.f32 0.5, %v337_v0  ;;  %v525_v0 = vld [vmem:[%s2072_s10 + $0x90] sm:$0xff] }
 0x259   :  { %v342_v6 = vmul.f32 0.5, %v339_v4  ;;  %v1951_v4 = vpack.c.bf16 %v526_v1, %v525_v0 }
 0x25a   :  { %1392 = vtanh.f32 %v341_v5  ;;  %v1958_v5 = vld [vmem:[%s2072_s10 + $0xa0] sm:$0xff] }
 0x25b   :  { %1394 = vtanh.f32 %v342_v6  ;;  %1269 = vmatpush1.bf16.msra.mxu0 %v1951_v4  ;;  %v416_v6 = vlaneseq }
 0x25c   :  { %572 = vmatprep.subr.mxu0 %v1453_v3 }
 0x25f   :  { %573 = vmatpush1.msra.mxu0 %v1958_v5 }
 0x260   :  { %1278 = vmatprep.subr.msk.bf16.mxu0 %vm1571_vm4, %v1826_v9 }
 0x264   :  { %v1393_v12 = vpop.eup %1392 }
 0x265   :  { %v1395_v15 = vpop.eup %1394  ;;  %v345_v34 = vmul.f32 0.5, %v1393_v12  ;;  %v1964_v12 = vshrl.u32 %v416_v6, 7 }
 0x266   :  { %v346_v38 = vmul.f32 0.5, %v1395_v15 }
 0x267   :  { %v347_v8 = vadd.f32 0.5, %v345_v34  ;;  %v418_v15 = vsub.s32 0, %v1964_v12  ;;  %v414_v34 = vld [vmem:[%s2071_s9] sm:$0x3] }
 0x268   :  { %v348_v20 = vadd.f32 0.5, %v346_v38  ;;  %v422_v38 = vsub.s32 1, %v1964_v12  ;;  %v1072_v12 = vld [vmem:[%s2073_s11] sm:$0x1] }
 0x269   :  { %v355_v24 = vmul.f32 %v1594_v32, %v347_v8  ;;  %v419_v8 = vrot.slane %v414_v34, %v418_v15 }
 0x26a   :  { %v356_v25 = vmul.f32 %v1594_v32, %v348_v20  ;;  %v624_v32 = vld [vmem:[%s2063_s1] sm:$0xf]  ;;  %v423_v20 = vrot.slane %v414_v34, %v422_v38 }
 0x26b   :  { %v357_v28 = vsel %vm73_vm1, %v355_v24, 0.0 }
 0x26c   :  { %v358_v30 = vrot.slane %v357_v28, 4  ;;  %v365_v7 = vsel %vm364_vm7, %v356_v25, 0.0 }
 0x26d   :  { %v366_v36 = vrot.slane %v365_v7, 4 }
 0x26e   :  { %v359_v37 = vadd.f32 %v358_v30, %v357_v28 }
 0x26f   :  { %v367_v41 = vadd.f32 %v366_v36, %v365_v7 }
 0x270   :  { %v360_v43 = vrot.slane %v359_v37, 2 }
 0x271   :  { %v368_v47 = vrot.slane %v367_v41, 2 }
 0x272   :  { %v361_v48 = vadd.f32 %v360_v43, %v359_v37 }
 0x273   :  { %v369_v53 = vadd.f32 %v368_v47, %v367_v41  ;;  %v709_v47 = vld [vmem:[%s2065_s3] sm:$0xf] }
 0x274   :  { %v362_v55 = vrot.slane %v361_v48, 1 }
 0x275   :  { %v370_v58 = vrot.slane %v369_v53, 1 }
 0x276   :  { %v363_v62 = vadd.f32 %v362_v55, %v361_v48 }
 0x277   :  { %v371_v59 = vadd.f32 %v370_v58, %v369_v53 }
 0x279   :  { %1174 = vmatprep.mubr.msk.f32.mxu1 %vm426_vm8, %v371_v59 }
 0x27a   :  { %495 = vmatmul.mubr.f32.vlgmr.msra.gmra.mrb[2].mxu1 %v363_v62 }
 0x27b   :  { %1275 = vmatpush1.bf16.msk.msra.mxu1 %vm1571_vm4, %v1660_v14  ;;  %702 = vmatprep.mubr.f32.mxu1 %v1453_v3 }
 0x27e   :  { %1179 = vmatmul.mubr.msk.f32.vlgmr.msra.gmra.mrb[4].mxu1 %vm83_vm5, %v624_v32 }
 0x27f   :  { %880 = vmatprep.mubr.f32.mxu1 %v1453_v3 }
 0x34d   :  { %v496_v24 = vpop.f32.mrb[2].mxu1 }
 0x34e   :  { %v497_v25 = vadd.f32 %v496_v24, %v419_v8  ;;  %v498_v9 = vpop.f32.mrb[3].mxu1 }
 0x34f   :  { %v499_v28 = vadd.f32 %v498_v9, %v423_v20 }
 0x350   :  { %v503_v30 = vmul.f32 0.01, %v497_v25  ;;  %vm501_vm9 = vcmp.ge.f32.partialorder %v497_v25, 0.0 }
 0x351   :  { %vm502_vm10 = vcmp.ge.f32.partialorder %v499_v28, 0.0  ;;  %v504_v7 = vmul.f32 0.01, %v499_v28  ;;  %v704_v36 = vpop.f32.mrb[4].mxu1 }
 0x352   :  { %v706_v37 = vpop.f32.mrb[5].mxu1  ;;  %v505_v43 = vsel %vm501_vm9, %v497_v25, %v503_v30 }
 0x353   :  { %v506_v41 = vsel %vm502_vm10, %v499_v28, %v504_v7  ;;  %v959_v28 = vld [vmem:[%s2071_s9] sm:$0x3]  ;;  %s1459_s9 = smov [#allocation5]  }
 0x354   :  { %1175 = vmatprep.mubr.msk.f32.mxu0 %vm426_vm8, %v506_v41  ;;  %v964_v30 = vrot.slane %v959_v28, %v418_v15  ;;  %v968_v7 = vrot.slane %v959_v28, %v422_v38  ;;  %s1153_s0 = sshll.u32 %s1459_s9, 4  ;;  %s1154_s0 = int_to_ptr.vmem [resolvable:$true] %s1153_s0 }
 0x355   :  { %597 = vmatmul.mubr.f32.vlgmr.msra.gmra.mrb[4].mxu0 %v505_v43  ;;  %s1426_s4 = scalar_lea.vmem %s1154_s0, 32  ;;  %p1431_p9 = scmp.lt.s32.totalorder %s1154_s0, %s1154_s0 }
 0x356   :  { %1281 = vmatpush1.bf16.msk.msra.mxu0 %vm1571_vm4, %v1660_v14  ;;  %783 = vmatprep.mubr.f32.mxu0 %v1453_v3  ;;  %v714_v14 = vpop.permute.xlu1 %713  ;;  %p1427_p8 = scmp.ne.s32.totalorder %s1154_s0, %s1426_s4  ;;  %p1432_p10 = scmp.lt.s32.totalorder %s1426_s4, %s1426_s4 }
 0x357   :  { %1283 = vmatprep.subr.bf16.mxu0 %v1625_v44 }
 0x358   :  { %p1433_p11 = por %p1432_p10, %p1431_p9 }
 0x359   :  { %1182 = vmatmul.mubr.msk.f32.vlgmr.msra.gmra.mrb[6].mxu0 %vm83_vm5, %v709_v47 }
 0x35a   :  { %1285 = vmatpush1.bf16.msra.mxu0 %v1639_v49  ;;  %p1434_p12 = pnand %p1433_p11, %p1427_p8 }
 0x35b   :  { %1287 = vmatprep.subr.bf16.mxu0 %v1641_v50 }
 0x35e   :  { %1289 = vmatpush1.bf16.msra.mxu0 %v1668_v17 }
 0x35f   :  { %1291 = vmatprep.subr.bf16.mxu0 %v1677_v19 }
 0x362   :  { %1293 = vmatpush1.bf16.msra.mxu0 %v1685_v22 }
 0x363   :  { %1295 = vmatprep.subr.bf16.mxu0 %v1695_v26 }
 0x366   :  { %1297 = vmatpush1.bf16.msra.mxu0 %v1703_v29 }
 0x367   :  { %1299 = vmatprep.subr.bf16.mxu0 %v1713_v35 }
 0x36a   :  { %1301 = vmatpush1.bf16.msra.mxu0 %v1721_v39 }
 0x36b   :  { %1303 = vmatprep.subr.bf16.mxu0 %v1731_v42 }
 0x36e   :  { %1305 = vmatpush1.bf16.msra.mxu0 %v1739_v46 }
 0x36f   :  { %1307 = vmatprep.subr.bf16.mxu0 %v1749_v51  ;;  %v629_v51 = vpop.permute.xlu0 %628 }
 0x372   :  { %1309 = vmatpush1.bf16.msra.mxu0 %v1757_v54 }
 0x373   :  { %1311 = vmatprep.subr.bf16.mxu0 %v1767_v57  ;;  %v705_v57 = vadd.f32 %v704_v36, %v629_v51  ;;  %v899_v53 = vpop.permute.xlu0 %898 }
 0x376   :  { %1313 = vmatpush1.bf16.msra.mxu0 %v1775_v60 }
 0x377   :  { %1315 = vmatprep.subr.bf16.mxu0 %v1785_v63  ;;  %v707_v63 = vadd.f32 %v706_v37, %v629_v51 }
 0x37a   :  { %1317 = vmatpush1.bf16.msra.mxu0 %v1793_v2 }
 0x37b   :  { %1319 = vmatprep.subr.bf16.mxu0 %v1805_v10 }
 0x37e   :  { %1321 = vmatpush1.bf16.msra.mxu0 %v1811_v13 }
 0x37f   :  { %1014 = vmatprep.subr.mxu0 %v1821_v16  ;;  %v800_v16 = vld [vmem:[#allocation2] sm:$0xf] }
 0x382   :  { %1015 = vmatpush1.msra.mxu0 %v1832_v33  ;;  %v805_v33 = vpop.permute.xlu1 %804 }
 0x428   :  { %v598_v44 = vpop.f32.mrb[4].mxu0 }
 0x429   :  { %v599_v49 = vadd.f32 %v598_v44, %v528_v23  ;;  %v600_v50 = vpop.f32.mrb[5].mxu0 }
 0x42b   :  { %603 = vst.msk [vmem:[#allocation5] sm:$0x1] %vm602_vm11, %v599_v49 }
 0x42c   :  { %v785_v17 = vpop.f32.mrb[6].mxu0 }
 0x42d   :  { %v786_v19 = vadd.f32 %v785_v17, %v714_v14  ;;  %v787_v22 = vpop.f32.mrb[7].mxu0 }
 0x42e   :  { %v788_v26 = vadd.f32 %v787_v22, %v714_v14 }
 0x42f   :  { %v790_v29 = vmul.f32 0.5, %v786_v19 }
 0x430   :  { %v791_v35 = vmul.f32 0.5, %v788_v26 }
 0x431   :  { %1396 = vtanh.f32 %v790_v29 }
 0x432   :  { %1398 = vtanh.f32 %v791_v35 }
 0x43b   :  { %v1397_v39 = vpop.eup %1396 }
 0x43c   :  { %v1399_v42 = vpop.eup %1398  ;;  %v794_v46 = vmul.f32 0.5, %v1397_v39 }
 0x43d   :  { %v795_v54 = vmul.f32 0.5, %v1399_v42 }
 0x43e   :  { %v796_v60 = vadd.f32 0.5, %v794_v46 }
 0x43f   :  { %v797_v2 = vadd.f32 0.5, %v795_v54 }
 0x440   :  { %v798_v10 = vmul.f32 %v796_v60, %v705_v57 }
 0x441   :  { %v799_v13 = vmul.f32 %v797_v2, %v707_v63 }
 0x443   :  { %1183 = vmatprep.subr.msk.mxu1 %vm73_vm1, %v799_v13 }
 0x444   :  { %1184 = vmatpush1.msk.msra.mxu1 %vm73_vm1, %v798_v10 }
 0x445   :  { %1185 = vmatmul.mubr.msk.f32.vlgmr.msra.gmra.mrb[6].mxu1 %vm260_vm6, %v800_v16  ;;  %1322 = vmatprep.subr.bf16.mxu1 %v1458_v11 }
 0x446   :  { %1324 = vmatpush1.bf16.msra.mxu1 %v1848_v18 }
 0x447   :  { %1325 = vmatprep.subr.bf16.mxu1 %v1458_v11 }
 0x44a   :  { %1327 = vmatpush1.bf16.msra.mxu1 %v1854_v21 }
 0x44b   :  { %1328 = vmatprep.subr.bf16.mxu1 %v1458_v11 }
 0x44e   :  { %1330 = vmatpush1.bf16.msra.mxu1 %v1864_v27 }
 0x44f   :  { %1331 = vmatprep.subr.bf16.mxu1 %v1458_v11 }
 0x452   :  { %1333 = vmatpush1.bf16.msra.mxu1 %v1874_v31 }
 0x453   :  { %1334 = vmatprep.subr.bf16.mxu1 %v1458_v11 }
 0x456   :  { %1336 = vmatpush1.bf16.msra.mxu1 %v1884_v40 }
 0x457   :  { %1337 = vmatprep.subr.bf16.mxu1 %v1458_v11 }
 0x45a   :  { %1339 = vmatpush1.bf16.msra.mxu1 %v1894_v45 }
 0x45b   :  { %1340 = vmatprep.subr.bf16.mxu1 %v1458_v11 }
 0x45e   :  { %1342 = vmatpush1.bf16.msra.mxu1 %v1904_v52 }
 0x45f   :  { %1343 = vmatprep.subr.bf16.mxu1 %v1458_v11 }
 0x462   :  { %1345 = vmatpush1.bf16.msra.mxu1 %v1914_v56 }
 0x463   :  { %1346 = vmatprep.subr.bf16.mxu1 %v1458_v11 }
 0x466   :  { %1348 = vmatpush1.bf16.msra.mxu1 %v1924_v61 }
 0x467   :  { %1349 = vmatprep.subr.bf16.mxu1 %v1458_v11 }
 0x46a   :  { %1351 = vmatpush1.bf16.msra.mxu1 %v1951_v4 }
 0x46b   :  { %1116 = vmatprep.subr.mxu1 %v1453_v3 }
 0x46e   :  { %1117 = vmatpush1.msra.mxu1 %v1958_v5 }
 0x518   :  { %v882_v18 = vpop.f32.mrb[6].mxu1 }
 0x519   :  { %v883_v21 = vadd.f32 %v882_v18, %v805_v33  ;;  %v884_v27 = vpop.f32.mrb[7].mxu1 }
 0x51a   :  { %v885_v31 = vadd.f32 %v884_v27, %v805_v33 }
 0x51b   :  { %v887_v40 = vmul.f32 0.5, %v883_v21 }
 0x51c   :  { %v888_v45 = vmul.f32 0.5, %v885_v31 }
 0x51d   :  { %1400 = vtanh.f32 %v887_v40 }
 0x51e   :  { %1402 = vtanh.f32 %v888_v45 }
 0x527   :  { %v1401_v52 = vpop.eup %1400 }
 0x528   :  { %v1403_v56 = vpop.eup %1402  ;;  %v891_v61 = vmul.f32 0.5, %v1401_v52 }
 0x529   :  { %v892_v48 = vmul.f32 0.5, %v1403_v56 }
 0x52a   :  { %v893_v11 = vadd.f32 0.5, %v891_v61 }
 0x52b   :  { %v894_v55 = vadd.f32 0.5, %v892_v48 }
 0x52c   :  { %v901_v58 = vmul.f32 %v899_v53, %v893_v11 }
 0x52d   :  { %v902_v3 = vmul.f32 %v899_v53, %v894_v55 }
 0x52e   :  { %v903_v59 = vsel %vm73_vm1, %v901_v58, 0.0 }
 0x52f   :  { %v904_v62 = vrot.slane %v903_v59, 4  ;;  %v910_v32 = vsel %vm364_vm7, %v902_v3, 0.0 }
 0x530   :  { %v911_v0 = vrot.slane %v910_v32, 4 }
 0x531   :  { %v905_v1 = vadd.f32 %v904_v62, %v903_v59 }
 0x532   :  { %v912_v4 = vadd.f32 %v911_v0, %v910_v32 }
 0x533   :  { %v906_v5 = vrot.slane %v905_v1, 2 }
 0x534   :  { %v913_v6 = vrot.slane %v912_v4, 2 }
 0x535   :  { %v907_v34 = vadd.f32 %v906_v5, %v905_v1 }
 0x536   :  { %v914_v8 = vadd.f32 %v913_v6, %v912_v4 }
 0x537   :  { %v908_v20 = vrot.slane %v907_v34, 1 }
 0x538   :  { %v915_v24 = vrot.slane %v914_v8, 1 }
 0x539   :  { %v909_v9 = vadd.f32 %v908_v20, %v907_v34 }
 0x53a   :  { %v916_v25 = vadd.f32 %v915_v24, %v914_v8 }
 0x53c   :  { %1186 = vmatprep.mubr.msk.f32.mxu0 %vm426_vm8, %v916_v25 }
 0x53d   :  { %1039 = vmatmul.mubr.f32.vlgmr.msra.gmra.mrb[8].mxu0 %v909_v9 }
 0x610   :  { %v1040_v36 = vpop.f32.mrb[8].mxu0 }
 0x611   :  { %v1041_v37 = vadd.f32 %v1040_v36, %v964_v30  ;;  %v1042_v41 = vpop.f32.mrb[9].mxu0 }
 0x612   :  { %v1043_v43 = vadd.f32 %v1042_v41, %v968_v7 }
 0x613   :  { %v1047_v47 = vmul.f32 0.01, %v1041_v37  ;;  %vm1045_vm12 = vcmp.ge.f32.partialorder %v1041_v37, 0.0 }
 0x614   :  { %vm1046_vm13 = vcmp.ge.f32.partialorder %v1043_v43, 0.0  ;;  %v1048_v23 = vmul.f32 0.01, %v1043_v43 }
 0x615   :  { %v1049_v49 = vsel %vm1045_vm12, %v1041_v37, %v1047_v47 }
 0x616   :  { %v1050_v44 = vsel %vm1046_vm13, %v1043_v43, %v1048_v23 }
 0x617   :  { %1187 = vmatprep.mubr.msk.f32.mxu1 %vm426_vm8, %v1050_v44 }
 0x618   :  { %1141 = vmatmul.mubr.f32.vlgmr.msra.gmra.mrb[8].mxu1 %v1049_v49 }
 0x6eb   :  { %v1142_v15 = vpop.f32.mrb[8].mxu1 }
 0x6ec   :  { %v1143_v38 = vadd.f32 %v1142_v15, %v1072_v12  ;;  %v1144_v50 = vpop.f32.mrb[9].mxu1 }
 0x6ee   :  { %1147 = vst.msk [vmem:[#allocation5 + $0x1] sm:$0x1] %vm602_vm11, %v1143_v38 }
 0x6ef   :  { %1437 = shalt.err (!%p1434_p12)
}
 0x6f0   :  { %s1438_s13 = scalar_lea.hbm %s2074_s12, 32 }
 0x6f1   :  { %p1439_p13 = scmp.ne.s32.totalorder %s2074_s12, %s1438_s13  ;;  %p1442_p0 = scmp.lt.u32.totalorder %s1438_s13, %s2074_s12 }
 0x6f3   :  { %p1444_p1 = pnand %p1442_p0, %p1439_p13 }
 0x6f5   :  { %1447 = shalt.err (!%p1444_p1)
}
 0x6f6   :  { %s1460_s16 = smov 16   ;;  %s1461_s17 = smov 1  }
 0x6f7   :  { %1159 = dma.vmem_to_hbm [thread:$0]  %s1154_s0, 32, %s2074_s12, [#allocation4], %s1460_s16, %s1460_s16, %s1461_s17  }
 0x6f8   :  { %1450 = dma.done.wait [#allocation4], 32  }
 0x6f9   :  { %1451 = vsyncadd [#allocation4], 4294967264 }
 0x6fa   :  { %1163 = vsyncpa [#allocation3], 1 }
 0x6fb   :  { %1164 = vsyncpa [#allocation4], 1 }

</bundles_post_ra>
